<compile_context>
chip_gen: v5e
topology: v5e:2x2
jax: 0.10.0
libtpu: 0.0.40
codegen_flags: <defaults>
</compile_context>

<pallas_src>
import numpy as np

import jax
import jax.numpy as jnp
from jax.experimental import pallas as pl
from jax.experimental.pallas import tpu as pltpu


def _round_up(x, m):
    return ((x + m - 1) // m) * m


def _choose_batch_tile(B):
    """Batch tile TB. Grid = ceil(B / TB) after padding B up to a TB multiple."""
    if B <= 256:
        # Single tile: TB == padded batch, grid == 1, no lane-alignment needed
        # (the output block then spans the full lane extent).
        return _round_up(B, 8)
    # Multi-tile: 128-aligned tiles of at most 512 rows, chosen so the grid has
    # >= 2 steps (v7x megacore sharding of the "parallel" batch axis).
    n128 = (B + 127) // 128
    tiles_per_block = max(1, min(4, n128 // 2))
    return 128 * tiles_per_block


def _pad2(a, rows, cols):
    pr, pc = rows - a.shape[0], cols - a.shape[1]
    if pr == 0 and pc == 0:
        return a
    return jnp.pad(a, ((0, pr), (0, pc)))


def critic_kernel(x_ref, w1_ref, b1_ref, w2_ref, b2_ref, w3_ref, b3_ref, q_ref):
    """One batch tile: Q = fc3(relu(fc2(relu(fc1([state, action])))))."""
    wdt = w1_ref.dtype  # MXU input dtype (bf16 by default); accumulate in f32.

    # fc1: (TB, S+A) @ (S+A, Hp)  -> f32, bias + ReLU on the VPU in f32.
    l1 = jnp.dot(x_ref[...], w1_ref[...], preferred_element_type=jnp.float32)
    l1 = jnp.maximum(l1 + b1_ref[...], 0.0)

    # fc2: (TB, Hp) @ (Hp, Hp) -> f32.
    l2 = jnp.dot(l1.astype(wdt), w2_ref[...], preferred_element_type=jnp.float32)
    l2 = jnp.maximum(l2 + b2_ref[...], 0.0)

    # fc3 (H -> 1): f32 VPU multiply + cross-lane reduce instead of an N=1 MXU
    # matmul (which would use 1 of 128/256 MXU columns).  b3 is an SMEM scalar.
    q = jnp.sum(l2 * w3_ref[...], axis=-1) + b3_ref[0, 0]      # (TB,)

    # Lane-dense store: batch lives on the lane axis of the (1, TB) out tile.
    q_ref[...] = q[None, :].astype(q_ref.dtype)


def critic_forward(state, action, params, compute_dtype=jnp.bfloat16):
    """state: (B, S), action: (B, A) -> Q: (B, 1) float32."""
    w1, b1, w2, b2, w3, b3 = params
    B, S = state.shape
    A = action.shape[1]
    Din = S + A
    H = w1.shape[1]
    assert w1.shape[0] == Din

    f32 = jnp.float32
    Hp = _round_up(H, 128)                 # lane-align hidden dim (zero pad)
    TB = _choose_batch_tile(B)             # batch tile
    Bp = _round_up(B, TB)
    grid = (Bp // TB,)

    # ---- weight / bias preparation (zero padding keeps the math exact). ----
    w1p = _pad2(w1.astype(f32), Din, Hp).astype(compute_dtype)   # (Din, Hp)
    b1p = _pad2(b1.astype(f32), 1, Hp)                           # (1,   Hp) f32
    w2p = _pad2(w2.astype(f32), Hp, Hp).astype(compute_dtype)    # (Hp,  Hp)
    b2p = _pad2(b2.astype(f32), 1, Hp)                           # (1,   Hp) f32
    w3r = _pad2(w3.astype(f32).T, 1, Hp)                         # (1,   Hp) f32
    b3s = b3.astype(f32).reshape(1, 1)                           # SMEM scalar

    # ---- activations: concat once in the wrapper (concat-free kernel fc1). --
    x = jnp.concatenate([state, action], axis=1)
    if x.dtype != compute_dtype:
        x = x.astype(compute_dtype)
    if Bp != B:                                  # skip the pad when it's a no-op
        x = jnp.pad(x, ((0, Bp - B), (0, 0)))

    wbytes = int(np.dtype(compute_dtype).itemsize)
    cost = pl.CostEstimate(
        flops=2 * Bp * (Din * Hp + Hp * Hp + Hp),
        transcendentals=0,
        bytes_accessed=(wbytes * (Din * Hp + Hp * Hp)        # W1, W2
                        + 4 * (3 * Hp + 1)                   # b1, b2, w3, b3 (f32)
                        + wbytes * Bp * Din                  # streamed activations
                        + 4 * Bp),                           # (1, Bp) f32 output
    )

    resident = lambda i: (0, 0)   # weights/biases: same block every grid step

    out_padded = pl.pallas_call(
        critic_kernel,
        out_shape=jax.ShapeDtypeStruct((1, Bp), jnp.float32),
        grid=grid,
        in_specs=[
            pl.BlockSpec((TB, Din), lambda i: (i, 0)),   # x tile (streamed)
            pl.BlockSpec((Din, Hp), resident),           # W1 (resident)
            pl.BlockSpec((1, Hp), resident),             # b1
            pl.BlockSpec((Hp, Hp), resident),            # W2
            pl.BlockSpec((1, Hp), resident),             # b2
            pl.BlockSpec((1, Hp), resident),             # W3 as a row
            pl.BlockSpec(memory_space=pltpu.MemorySpace.SMEM),  # b3 scalar
        ],
        out_specs=pl.BlockSpec((1, TB), lambda i: (0, i)),      # lane-dense Q
        compiler_params=pltpu.CompilerParams(
            dimension_semantics=("parallel",),           # megacore on v7x
            vmem_limit_bytes=32 * 1024 * 1024,
        ),
        cost_estimate=cost,
    )(x, w1p, b1p, w2p, b2p, w3r, b3s)

    return out_padded[0, :B].reshape(B, 1)


critic_forward_jit = jax.jit(critic_forward, static_argnames=("compute_dtype",))


def init_critic_params(key, space_states_dim, space_actions_dim, hidden_dim=300):
    """Deterministic init mirroring nn.Linear's default U(-1/sqrt(fan_in), +)."""
    in_dim = space_states_dim + space_actions_dim
    ks = jax.random.split(key, 6)

    def linear(kw, kb, fan_in, fan_out):
        bound = 1.0 / jnp.sqrt(jnp.float32(fan_in))
        w = jax.random.uniform(kw, (fan_in, fan_out), jnp.float32, -bound, bound)
        b = jax.random.uniform(kb, (1, fan_out), jnp.float32, -bound, bound)
        return w, b

    w1, b1 = linear(ks[0], ks[1], in_dim, hidden_dim)
    w2, b2 = linear(ks[2], ks[3], hidden_dim, hidden_dim)
    w3, b3 = linear(ks[4], ks[5], hidden_dim, 1)
    return (w1, b1, w2, b2, w3, b3)


def _reference(state, action, params):
    w1, b1, w2, b2, w3, b3 = params
    x = jnp.concatenate([state, action], axis=1)
    h = jnp.maximum(x @ w1 + b1, 0.0)
    h = jnp.maximum(h @ w2 + b2, 0.0)
    return h @ w3 + b3


if __name__ == "__main__":
    # Small shapes consistent with the module's forward.
    B, S, A, H = 2, 8, 4, 32

    key = jax.random.PRNGKey(0)
    k_state, k_action, k_params = jax.random.split(key, 3)

    state = jax.random.normal(k_state, (B, S), dtype=jnp.float32)
    action = jax.random.normal(k_action, (B, A), dtype=jnp.float32)
    params = init_critic_params(k_params, S, A, hidden_dim=H)

    ref = _reference(state, action, params)

    # f32 path: tight check against the pure-JAX reference.
    q_f32 = critic_forward_jit(state, action, params, compute_dtype=jnp.float32)
    jax.block_until_ready(q_f32)
    assert q_f32.shape == (B, 1)
    assert jnp.allclose(q_f32, ref, atol=1e-4, rtol=1e-4)

    # Default bf16 path (halved HBM traffic, full-rate MXU): looser tolerance.
    q_bf16 = critic_forward_jit(state, action, params)
    jax.block_until_ready(q_bf16)
    assert q_bf16.shape == (B, 1)
    assert jnp.allclose(q_bf16, ref, atol=5e-2, rtol=5e-2)

    # Multi-tile path (grid >= 2, TB = 128) at the module's default hidden_dim.
    B2, H2 = 260, 300
    k2s, k2a, k2p = jax.random.split(jax.random.PRNGKey(1), 3)
    state2 = jax.random.normal(k2s, (B2, S), dtype=jnp.float32)
    action2 = jax.random.normal(k2a, (B2, A), dtype=jnp.float32)
    params2 = init_critic_params(k2p, S, A, hidden_dim=H2)
    q2 = critic_forward_jit(state2, action2, params2)
    jax.block_until_ready(q2)
    assert q2.shape == (B2, 1)
    assert jnp.allclose(q2, _reference(state2, action2, params2),
                        atol=5e-2, rtol=5e-2)

    print("KERNEL_OK")
</pallas_src>

<mosaic_0001>
module attributes {stable_mosaic.version = 11 : i64} {
  func.func @critic_kernel(%arg0: i32, %arg1: memref<8x12xf32, #tpu.memory_space<vmem>>, %arg2: memref<12x128xf32, #tpu.memory_space<vmem>>, %arg3: memref<1x128xf32, #tpu.memory_space<vmem>>, %arg4: memref<128x128xf32, #tpu.memory_space<vmem>>, %arg5: memref<1x128xf32, #tpu.memory_space<vmem>>, %arg6: memref<1x128xf32, #tpu.memory_space<vmem>>, %arg7: memref<1x1xf32, #tpu.memory_space<smem>>, %arg8: memref<1x8xf32, #tpu.memory_space<vmem>>) attributes {dimension_semantics = [#tpu.dimension_semantics<parallel>], iteration_bounds = array<i64: 1>, scalar_prefetch = 0 : i64, scratch_operands = 0 : i64, tpu.core_type = #tpu.core_type<tc>, window_params = [{transform_indices = @transform_0, window_bounds = array<i64: 8, 12>}, {pipeline_mode = #tpu.pipeline_mode<synchronous>, transform_indices = @transform_1, window_bounds = array<i64: 12, 128>}, {pipeline_mode = #tpu.pipeline_mode<synchronous>, transform_indices = @transform_2, window_bounds = array<i64: 1, 128>}, {pipeline_mode = #tpu.pipeline_mode<synchronous>, transform_indices = @transform_3, window_bounds = array<i64: 128, 128>}, {pipeline_mode = #tpu.pipeline_mode<synchronous>, transform_indices = @transform_4, window_bounds = array<i64: 1, 128>}, {pipeline_mode = #tpu.pipeline_mode<synchronous>, transform_indices = @transform_5, window_bounds = array<i64: 1, 128>}, {transform_indices = @transform_6, window_bounds = array<i64: 1, 1>}, {transform_indices = @transform_7, window_bounds = array<i64: 1, 8>}]} {
    %c0 = arith.constant 0 : index
    %c0_0 = arith.constant 0 : index
    %0 = vector.load %arg1[%c0, %c0_0] : memref<8x12xf32, #tpu.memory_space<vmem>>, vector<8x12xf32>
    %c0_1 = arith.constant 0 : index
    %c0_2 = arith.constant 0 : index
    %1 = vector.load %arg2[%c0_1, %c0_2] : memref<12x128xf32, #tpu.memory_space<vmem>>, vector<12x128xf32>
    %cst = arith.constant dense<0.000000e+00> : vector<8x128xf32>
    %2 = tpu.matmul %0, %1, %cst {dimension_numbers = #tpu.dot_dimension_numbers<[1], [0], [0], [1], [0, 0, 1, 1], [], []>} : vector<8x12xf32>, vector<12x128xf32>, vector<8x128xf32> -> vector<8x128xf32>
    %c0_3 = arith.constant 0 : index
    %c0_4 = arith.constant 0 : index
    %3 = vector.load %arg3[%c0_3, %c0_4] : memref<1x128xf32, #tpu.memory_space<vmem>>, vector<1x128xf32>
    %4 = vector.broadcast %3 : vector<1x128xf32> to vector<8x128xf32>
    %5 = arith.addf %2, %4 : vector<8x128xf32>
    %cst_5 = arith.constant 0.000000e+00 : f32
    %6 = vector.broadcast %cst_5 : f32 to vector<8x128xf32>
    %7 = arith.maximumf %5, %6 : vector<8x128xf32>
    %c0_6 = arith.constant 0 : index
    %c0_7 = arith.constant 0 : index
    %8 = vector.load %arg4[%c0_6, %c0_7] : memref<128x128xf32, #tpu.memory_space<vmem>>, vector<128x128xf32>
    %cst_8 = arith.constant dense<0.000000e+00> : vector<8x128xf32>
    %9 = tpu.matmul %7, %8, %cst_8 {dimension_numbers = #tpu.dot_dimension_numbers<[1], [0], [0], [1], [0, 0, 1, 1], [], []>} : vector<8x128xf32>, vector<128x128xf32>, vector<8x128xf32> -> vector<8x128xf32>
    %c0_9 = arith.constant 0 : index
    %c0_10 = arith.constant 0 : index
    %10 = vector.load %arg5[%c0_9, %c0_10] : memref<1x128xf32, #tpu.memory_space<vmem>>, vector<1x128xf32>
    %11 = vector.broadcast %10 : vector<1x128xf32> to vector<8x128xf32>
    %12 = arith.addf %9, %11 : vector<8x128xf32>
    %cst_11 = arith.constant 0.000000e+00 : f32
    %13 = vector.broadcast %cst_11 : f32 to vector<8x128xf32>
    %14 = arith.maximumf %12, %13 : vector<8x128xf32>
    %c0_12 = arith.constant 0 : index
    %c0_13 = arith.constant 0 : index
    %15 = vector.load %arg6[%c0_12, %c0_13] : memref<1x128xf32, #tpu.memory_space<vmem>>, vector<1x128xf32>
    %16 = vector.broadcast %15 : vector<1x128xf32> to vector<8x128xf32>
    %17 = arith.mulf %14, %16 : vector<8x128xf32>
    %cst_14 = arith.constant dense<0.000000e+00> : vector<8xf32>
    %18 = vector.multi_reduction <add>, %17, %cst_14 [1] : vector<8x128xf32> to vector<8xf32>
    %c0_15 = arith.constant 0 : index
    %c0_16 = arith.constant 0 : index
    %19 = memref.load %arg7[%c0_15, %c0_16] : memref<1x1xf32, #tpu.memory_space<smem>>
    %20 = vector.broadcast %19 : f32 to vector<8xf32>
    %21 = arith.addf %18, %20 : vector<8xf32>
    %22 = vector.shape_cast %21 : vector<8xf32> to vector<1x8xf32>
    %c0_17 = arith.constant 0 : index
    %c0_18 = arith.constant 0 : index
    %23 = vector.load %arg8[%c0_17, %c0_18] : memref<1x8xf32, #tpu.memory_space<vmem>>, vector<1x8xf32>
    tpu.vector_store %arg8[%c0_17, %c0_18], %22 {strides = array<i32>} : memref<1x8xf32, #tpu.memory_space<vmem>>, vector<1x8xf32>,
    return
  }
  func.func @transform_0(%arg0: i32) -> (i32, i32) {
    %c0_i32 = arith.constant 0 : i32
    %c0_i32_0 = arith.constant 0 : i32
    return %arg0, %c0_i32 : i32, i32
  }
  func.func @transform_1(%arg0: i32) -> (i32, i32) {
    %c0_i32 = arith.constant 0 : i32
    %c0_i32_0 = arith.constant 0 : i32
    %c0_i32_1 = arith.constant 0 : i32
    return %c0_i32, %c0_i32_0 : i32, i32
  }
  func.func @transform_2(%arg0: i32) -> (i32, i32) {
    %c0_i32 = arith.constant 0 : i32
    %c0_i32_0 = arith.constant 0 : i32
    %c0_i32_1 = arith.constant 0 : i32
    return %c0_i32, %c0_i32_0 : i32, i32
  }
  func.func @transform_3(%arg0: i32) -> (i32, i32) {
    %c0_i32 = arith.constant 0 : i32
    %c0_i32_0 = arith.constant 0 : i32
    %c0_i32_1 = arith.constant 0 : i32
    return %c0_i32, %c0_i32_0 : i32, i32
  }
  func.func @transform_4(%arg0: i32) -> (i32, i32) {
    %c0_i32 = arith.constant 0 : i32
    %c0_i32_0 = arith.constant 0 : i32
    %c0_i32_1 = arith.constant 0 : i32
    return %c0_i32, %c0_i32_0 : i32, i32
  }
  func.func @transform_5(%arg0: i32) -> (i32, i32) {
    %c0_i32 = arith.constant 0 : i32
    %c0_i32_0 = arith.constant 0 : i32
    %c0_i32_1 = arith.constant 0 : i32
    return %c0_i32, %c0_i32_0 : i32, i32
  }
  func.func @transform_6(%arg0: i32) -> (i32, i32) {
    %c0_i32 = arith.constant 0 : i32
    %c0_i32_0 = arith.constant 0 : i32
    %c0_i32_1 = arith.constant 0 : i32
    return %c0_i32, %c0_i32_0 : i32, i32
  }
  func.func @transform_7(%arg0: i32) -> (i32, i32) {
    %c0_i32 = arith.constant 0 : i32
    %c0_i32_0 = arith.constant 0 : i32
    return %c0_i32, %arg0 : i32, i32
  }
}

</mosaic_0001>

<bundles_post_ra>
// kernel: critic_forward.1
= control target key start
LH: loop header
LB: loop body
LE: loop exit
PB: predicated region body
PF: predicated region fallthrough
CT: control target
= control target key end

     0   :  { %vm38_vm0 = vcmask 1043456   ;;  %vm34_vm1 = vcmask 97280   ;;  %v115_v29 = vlaneseq  ;;  %vm119_vm2 = vcmask 57344   ;;  %s242_s1 = inlined_call_operand.vmem [shape: f32[12,128], index: 1, kind: input, shape index: {}]   ;;  %s243_s0 = inlined_call_operand.vmem [shape: f32[8,12], index: 0, kind: input, shape index: {}]   ;;  %s244_s3 = inlined_call_operand.vmem [shape: f32[128,128], index: 3, kind: input, shape index: {}]   ;;  %s245_s2 = inlined_call_operand.vmem [shape: f32[1,128], index: 2, kind: input, shape index: {}]   ;;  %s246_s4 = inlined_call_operand.vmem [shape: f32[1,128], index: 4, kind: input, shape index: {}]   ;;  %s247_s5 = inlined_call_operand.vmem [shape: f32[1,128], index: 5, kind: input, shape index: {}]   ;;  %s248_s6 = inlined_call_operand.<no memory space> [shape: f32[1,1], index: 6, kind: input, shape index: {}]   ;;  %s249_s7 = inlined_call_operand.vmem [shape: f32[1,8], index: 7, kind: output, shape index: {}]  }
   0x1   :  { %v29_v0 = vld [vmem:[%s242_s1 + $0x8] sm:$0xf]  ;;  %v28_v1 = vld [vmem:[%s242_s1] sm:$0xff]  ;;  %v78_v3 = vld [vmem:[%s244_s3 + $0x78] sm:$0xff]  ;;  %v112_v30 = vstv %s248_s6 }
   0x2   :  { %125 = vmatpush.msk.msra.mxu0 %vm38_vm0, %v29_v0  ;;  %v27_v2 = vld [vmem:[%s243_s0] sm:$0xff]  ;;  %v77_v4 = vld [vmem:[%s244_s3 + $0x70] sm:$0xff]  ;;  %83 = vmatpush.msra.mxu1 %v78_v3  ;;  %v76_v5 = vld [vmem:[%s244_s3 + $0x68] sm:$0xff]  ;;  %v116_v31 = vand.u32 127, %v115_v29 }
   0x3   :  { %v75_v6 = vld [vmem:[%s244_s3 + $0x60] sm:$0xff]  ;;  %v74_v7 = vld [vmem:[%s244_s3 + $0x58] sm:$0xff]  ;;  %v73_v8 = vld [vmem:[%s244_s3 + $0x50] sm:$0xff] }
   0x4   :  { %57 = vmatpush.msra.mxu0 %v28_v1  ;;  %84 = vmatpush.msra.mxu1 %v77_v4  ;;  %v72_v9 = vld [vmem:[%s244_s3 + $0x48] sm:$0xff]  ;;  %v71_v10 = vld [vmem:[%s244_s3 + $0x40] sm:$0xff]  ;;  %v70_v11 = vld [vmem:[%s244_s3 + $0x38] sm:$0xff] }
   0x5   :  { %126 = vmatmul.msk.f32.vlgmr.msra.gmra.mxu0 %vm34_vm1, %v27_v2  ;;  %v69_v12 = vld [vmem:[%s244_s3 + $0x30] sm:$0xff]  ;;  %v68_v13 = vld [vmem:[%s244_s3 + $0x28] sm:$0xff]  ;;  %v67_v14 = vld [vmem:[%s244_s3 + $0x20] sm:$0xff] }
   0x6   :  { %85 = vmatpush.msra.mxu1 %v76_v5  ;;  %v66_v15 = vld [vmem:[%s244_s3 + $0x18] sm:$0xff]  ;;  %v65_v16 = vld [vmem:[%s244_s3 + $0x10] sm:$0xff]  ;;  %v64_v17 = vld [vmem:[%s244_s3 + $0x8] sm:$0xff] }
   0x7   :  { %v63_v18 = vld [vmem:[%s244_s3] sm:$0xff] }
   0x8   :  { %86 = vmatpush.msra.mxu1 %v75_v6  ;;  %v127_v19 = vld [vmem:[%s245_s2] ss:$0 sm:$0xff] }
   0x9   :  { %v128_v23 = vld [vmem:[%s246_s4] ss:$0 sm:$0xff] }
   0xa   :  { %87 = vmatpush.msra.mxu1 %v74_v7  ;;  %v129_v26 = vld [vmem:[%s247_s5] ss:$0 sm:$0xff] }
   0xc   :  { %88 = vmatpush.msra.mxu1 %v73_v8 }
   0xe   :  { %89 = vmatpush.msra.mxu1 %v72_v9 }
  0x10   :  { %90 = vmatpush.msra.mxu1 %v71_v10 }
  0x12   :  { %91 = vmatpush.msra.mxu1 %v70_v11 }
  0x14   :  { %92 = vmatpush.msra.mxu1 %v69_v12 }
  0x16   :  { %93 = vmatpush.msra.mxu1 %v68_v13 }
  0x18   :  { %94 = vmatpush.msra.mxu1 %v67_v14 }
  0x1a   :  { %95 = vmatpush.msra.mxu1 %v66_v15 }
  0x1c   :  { %96 = vmatpush.msra.mxu1 %v65_v16 }
  0x1e   :  { %97 = vmatpush.msra.mxu1 %v64_v17 }
  0x20   :  { %98 = vmatpush.msra.mxu1 %v63_v18 }
  0x82   :  { %v59_v20 = vpop.f32.mrf.mxu0 }
  0x83   :  { %v60_v21 = vadd.f32 %v127_v19, %v59_v20 }
  0x85   :  { %v62_v22 = vmax.f32 %v60_v21, 0.0 }
  0x87   :  { %99 = vmatmul.f32.vlgmr.msra.gmra.mxu1 %v62_v22 }
 0x104   :  { %v100_v24 = vpop.f32.mrf.mxu1 }
 0x105   :  { %v101_v25 = vadd.f32 %v128_v23, %v100_v24 }
 0x107   :  { %v103_v27 = vmax.f32 %v101_v25, 0.0 }
 0x109   :  { %v108_v28 = vmul.f32 %v129_v26, %v103_v27 }
 0x10b   :  { %109 = vadd.xlane.f32.xlu0 %v108_v28 }
 0x17e   :  { %v110_v32 = vpop.xlane.xlu0 %109 }
 0x17f   :  { %v113_v33 = vadd.f32 %v112_v30, %v110_v32 }
 0x181   :  { %v117_v34 = vperm.slane %v113_v33, %v116_v31 }
 0x183   :  { %120 = vst.msk [vmem:[%s249_s7] sm:$0x1] %vm119_vm2, %v117_v34 }

</bundles_post_ra>
